<compile_context>
chip_gen: v6e
topology: v6e:2x2x1
jax: 0.10.0
libtpu: 0.0.40
codegen_flags: <defaults>
</compile_context>

<pallas_src>
import math
import numpy as np
import jax
import jax.numpy as jnp
from jax.experimental import pallas as pl
from jax.experimental.pallas import tpu as pltpu


# ----------------------------------------------------------------------------
# Deterministic mask generation (faithful numpy port of the module's __init__)
# TODO(synk): stochastic rejection-sampling mask generation is host-side numpy
#             (module __init__ logic), not a TPU kernel.
# ----------------------------------------------------------------------------
def _generate_masks_(m: int, n: int, s: float) -> np.ndarray:
    total_positions = int(m * s)
    masks = []
    for _ in range(n):
        new_vector = np.zeros([total_positions])
        idx = np.random.choice(range(total_positions), m, replace=False)
        new_vector[idx] = 1
        masks.append(new_vector)
    masks = np.array(masks)
    masks = masks[:, ~np.all(masks == 0, axis=0)]
    return masks


def _generate_masks(m: int, n: int, s: float) -> np.ndarray:
    masks = _generate_masks_(m, n, s)
    expected_size = int(m * s * (1 - (1 - 1 / s) ** n))
    while masks.shape[1] != expected_size:
        masks = _generate_masks_(m, n, s)
    return masks


def _generation_wrapper(c: int, n: int, scale: float) -> np.ndarray:
    if c < 10:
        raise ValueError("channels must be >= 10")
    if scale > 6.0:
        raise ValueError("scale must be <= 6")
    active_features = int(int(c) / (scale * (1 - (1 - 1 / scale) ** n)))
    masks = _generate_masks(active_features, n, scale)
    for s in np.linspace(max(0.8 * scale, 1.0), 1.5 * scale, 300):
        if masks.shape[-1] >= c:
            break
        masks = _generate_masks(active_features, n, s)
    new_upper_scale = s
    if masks.shape[-1] != c:
        for s in np.linspace(max(0.8 * scale, 1.0), new_upper_scale, 1000):
            if masks.shape[-1] >= c:
                break
            masks = _generate_masks(active_features, n, s)
    if masks.shape[-1] != c:
        raise ValueError("mask generation failed")
    return masks


# ----------------------------------------------------------------------------
# Per-chip budgets / alignment helpers
# ----------------------------------------------------------------------------
def _sublane_align(dtype) -> int:
    # Sub-32-bit dtypes pack along sublanes: a bf16 vreg is (16,128), int8 (32,128).
    return max(8, 32 // np.dtype(dtype).itemsize)


def _vmem_capacity_bytes() -> int:
    try:
        return int(pltpu.get_tpu_info().vmem_capacity_bytes)
    except Exception:
        return 64 << 20  # conservative default: v7x per-TensorCore VMEM


def _budgets():
    """Returns (per-block x byte budget, vmem_limit_bytes) for this chip."""
    cap = _vmem_capacity_bytes()
    if cap >= (96 << 20):            # v5e / v6e: 128 MiB physical VMEM
        return 12 << 20, 72 << 20
    return 6 << 20, 40 << 20         # v7x: 64 MiB per TensorCore


def _pick_row_tile(G: int, row_bytes: int, sub: int, tile_budget: int) -> int:
    """Rows per block: a multiple of `sub`, >= sub, x-bytes per block within
    `tile_budget` when possible, never larger than the padded group extent."""
    cap_rows = max(sub, (tile_budget // max(row_bytes, 1)) // sub * sub)
    g_pad = pl.cdiv(G, sub) * sub
    return min(cap_rows, g_pad)


# ----------------------------------------------------------------------------
# Pallas kernel: broadcast multiply of a row tile by its group mask
# ----------------------------------------------------------------------------
def _scale_kernel(x_ref, m_ref, o_ref):
    # Tiled path: x/o are (TG, Cb), m is (1, Cb).
    # Small path: x/o are (n, G, Cb), m is (n, 1, Cb).  Broadcasting handles both.
    o_ref[...] = x_ref[...] * m_ref[...]


def _grouped_scale(x3: jax.Array, m2: jax.Array, row_tile=None,
                   donate: bool = False) -> jax.Array:
    """x3: (n, G, Cb), m2: (n, Cb). Returns x3 * m2[:, None, :] via Pallas."""
    n, G, Cb = x3.shape
    itemsize = np.dtype(x3.dtype).itemsize
    sub = _sublane_align(x3.dtype)
    tile_budget, vmem_limit = _budgets()
    m3 = m2.reshape(n, 1, Cb)
    aliases = {0: 0} if donate else {}

    x_bytes = n * G * Cb * itemsize
    m_bytes = n * Cb * itemsize

    # --- Small-problem fast path: single grid step, whole arrays resident ----
    if row_tile is None and 2 * x_bytes + m_bytes <= tile_budget:
        return pl.pallas_call(
            _scale_kernel,
            out_shape=jax.ShapeDtypeStruct((n, G, Cb), x3.dtype),
            in_specs=[pl.BlockSpec(memory_space=pltpu.MemorySpace.VMEM),
                      pl.BlockSpec(memory_space=pltpu.MemorySpace.VMEM)],
            out_specs=pl.BlockSpec(memory_space=pltpu.MemorySpace.VMEM),
            compiler_params=pltpu.CompilerParams(vmem_limit_bytes=vmem_limit),
            cost_estimate=pl.CostEstimate(flops=n * G * Cb, transcendentals=0,
                                          bytes_accessed=2 * x_bytes + m_bytes),
            input_output_aliases=aliases,
        )(x3, m3)

    # --- Tiled 2-D grid path --------------------------------------------------
    row_bytes = Cb * itemsize
    if row_tile is not None:
        TG = int(row_tile)
        if TG <= 0 or TG % sub != 0:
            raise ValueError(
                f"row_tile must be a positive multiple of {sub} for dtype "
                f"{x3.dtype} (sublane packing); got {row_tile}")
    else:
        TG = _pick_row_tile(G, row_bytes, sub, tile_budget)
        # Keep at least ~4 grid steps so both v7x TensorCores stay busy
        # (matters for eval mode where n == 1).
        while TG > sub and n * pl.cdiv(G, TG) < 4:
            TG = max(sub, ((TG // 2) // sub) * sub)

    G_pad = pl.cdiv(G, TG) * TG
    if G_pad != G:
        x3 = jnp.pad(x3, ((0, 0), (0, G_pad - G), (0, 0)))

    block_bytes = TG * Cb * itemsize
    # in + out double-buffered (~4x block) + mask + slack.
    needed = 4 * block_bytes + 2 * Cb * itemsize + (2 << 20)
    vmem_limit = max(vmem_limit, needed)
    # TODO(synk): for extremely wide C (a single `sub`-row slab > tile_budget)
    # a channel grid axis with 128-multiple blocks would cap per-block bytes.

    out = pl.pallas_call(
        _scale_kernel,
        out_shape=jax.ShapeDtypeStruct((n, G_pad, Cb), x3.dtype),
        grid=(n, G_pad // TG),
        in_specs=[
            pl.BlockSpec((pl.Squeezed(), TG, Cb), lambda g, r: (g, r, 0)),
            # Mask block index depends only on g -> the (tiny) mask DMA is
            # elided while the row-tile index varies inside a group.
            pl.BlockSpec((pl.Squeezed(), 1, Cb), lambda g, r: (g, 0, 0)),
        ],
        out_specs=pl.BlockSpec((pl.Squeezed(), TG, Cb), lambda g, r: (g, r, 0)),
        compiler_params=pltpu.CompilerParams(
            dimension_semantics=("parallel", "parallel"),
            vmem_limit_bytes=int(vmem_limit)),
        cost_estimate=pl.CostEstimate(
            flops=n * G_pad * Cb, transcendentals=0,
            bytes_accessed=2 * n * G_pad * Cb * itemsize + m_bytes),
        input_output_aliases=aliases,
    )(x3, m3)
    return out[:, :G, :] if G_pad != G else out


def _masksembles_apply(x: jax.Array, masks: jax.Array, row_tile=None,
                       donate: bool = False) -> jax.Array:
    """Multiply row-block g (of N // n rows) of x by masks[g]. x:(N,C), masks:(n,C)."""
    N, C = x.shape
    n = masks.shape[0]
    if N % n != 0:
        raise ValueError(f"Batch size must be divisible by n, got {N} and {n}")
    G = N // n
    m = masks.astype(x.dtype)

    # Lane-dense repack: fold R rows so the channel (lane) dim becomes a
    # multiple of 128 (targeting 512-1024 lanes) -> unmasked wide vst and no
    # lane padding moved over HBM.  R = lcm(C, 128) // C generalizes beyond
    # divisors of 128 (e.g. C = 48, 96, 192).
    R = 1
    if C % 128 != 0:
        base = (C * 128 // math.gcd(C, 128)) // C          # lcm(C, 128) // C
        if base * C <= 1024 and G % base == 0:
            R = base
            while R * C < 512 and 2 * R * C <= 1024 and G % (2 * R) == 0:
                R *= 2
    if R > 1:
        out = _grouped_scale(x.reshape(n, G // R, R * C), jnp.tile(m, (1, R)),
                             row_tile=row_tile, donate=donate)
    else:
        out = _grouped_scale(x.reshape(n, G, C), m,
                             row_tile=row_tile, donate=donate)
    return out.reshape(N, C)


def masksembles1d_train(x: jax.Array, masks: jax.Array, row_tile=None,
                        donate: bool = False) -> jax.Array:
    """Training-mode Masksembles1D forward. x: (N, C), masks: (n, C)."""
    return _masksembles_apply(x, masks, row_tile=row_tile, donate=donate)


def masksembles1d_eval(x: jax.Array, masks: jax.Array, cnt: int, row_tile=None,
                       donate: bool = False) -> jax.Array:
    """Eval-mode forward: multiply every row by masks[cnt]."""
    # TODO(synk): the module's mutable self.cnt counter is advanced by the caller.
    return _masksembles_apply(x, masks[cnt][None, :], row_tile=row_tile,
                              donate=donate)


if __name__ == "__main__":
    # --- Module-faithful config: channels=16, n=4, scale=2.0, batch=8 --------
    channels, n_masks, scale = 16, 4, 2.0
    batch = 8

    np.random.seed(0)
    masks_np = _generation_wrapper(channels, n_masks, scale).astype(np.float32)
    masks = jnp.asarray(masks_np)                          # (n, C) float32

    key = jax.random.PRNGKey(0)
    x = jax.random.normal(key, (batch, channels), dtype=jnp.float32)

    # Training mode (exercises the single-step small-problem fast path).
    out = jax.block_until_ready(masksembles1d_train(x, masks))
    G = batch // n_masks
    ref = (x.reshape(n_masks, G, channels) * masks[:, None, :]).reshape(batch, channels)
    np.testing.assert_allclose(np.asarray(out), np.asarray(ref), rtol=0, atol=0)

    # Eval mode (n=1 group, lane-dense repack, small fast path).
    out_eval = jax.block_until_ready(masksembles1d_eval(x, masks, 0))
    np.testing.assert_allclose(np.asarray(out_eval),
                               np.asarray(x * masks[0][None, :]),
                               rtol=0, atol=0)

    # --- Larger f32 case: lane-dense repack + forced 2-D tiled grid ----------
    batch2 = 1024
    x2 = jax.random.normal(jax.random.PRNGKey(1), (batch2, channels),
                           dtype=jnp.float32)
    out2 = jax.block_until_ready(masksembles1d_train(x2, masks, row_tile=8))
    G2 = batch2 // n_masks
    ref2 = (x2.reshape(n_masks, G2, channels) * masks[:, None, :]).reshape(batch2, channels)
    np.testing.assert_allclose(np.asarray(out2), np.asarray(ref2), rtol=0, atol=0)

    # --- Awkward group size (G=3): exercises the pad-and-slice path ----------
    batch3 = 12
    x3 = jax.random.normal(jax.random.PRNGKey(2), (batch3, channels),
                           dtype=jnp.float32)
    out3 = jax.block_until_ready(masksembles1d_train(x3, masks, row_tile=8))
    G3 = batch3 // n_masks
    ref3 = (x3.reshape(n_masks, G3, channels) * masks[:, None, :]).reshape(batch3, channels)
    np.testing.assert_allclose(np.asarray(out3), np.asarray(ref3), rtol=0, atol=0)

    # --- bf16 case: dtype-aware (16-row) sublane alignment, tiled grid -------
    ch4, batch4 = 32, 1024
    masks4 = (jax.random.uniform(jax.random.PRNGKey(3), (n_masks, ch4)) > 0.5
              ).astype(jnp.bfloat16)
    x4 = jax.random.normal(jax.random.PRNGKey(4), (batch4, ch4), dtype=jnp.bfloat16)
    out4 = jax.block_until_ready(masksembles1d_train(x4, masks4, row_tile=16))
    G4 = batch4 // n_masks
    ref4 = (x4.reshape(n_masks, G4, ch4) * masks4[:, None, :]).reshape(batch4, ch4)
    np.testing.assert_allclose(np.asarray(out4).astype(np.float32),
                               np.asarray(ref4).astype(np.float32),
                               rtol=0, atol=0)

    print("KERNEL_OK")
</pallas_src>

<mosaic_0001>
module attributes {stable_mosaic.version = 11 : i64} {
  func.func @_scale_kernel(%arg0: memref<4x2x16xf32, #tpu.memory_space<vmem>>, %arg1: memref<4x1x16xf32, #tpu.memory_space<vmem>>, %arg2: memref<4x2x16xf32, #tpu.memory_space<vmem>>) attributes {dimension_semantics = [], scalar_prefetch = 0 : i64, scratch_operands = 0 : i64, tpu.core_type = #tpu.core_type<tc>} {
    %c0 = arith.constant 0 : index
    %c0_0 = arith.constant 0 : index
    %c0_1 = arith.constant 0 : index
    %0 = vector.load %arg0[%c0, %c0_0, %c0_1] : memref<4x2x16xf32, #tpu.memory_space<vmem>>, vector<4x2x16xf32>
    %c0_2 = arith.constant 0 : index
    %c0_3 = arith.constant 0 : index
    %c0_4 = arith.constant 0 : index
    %1 = vector.load %arg1[%c0_2, %c0_3, %c0_4] : memref<4x1x16xf32, #tpu.memory_space<vmem>>, vector<4x1x16xf32>
    %2 = vector.broadcast %1 : vector<4x1x16xf32> to vector<4x2x16xf32>
    %3 = arith.mulf %0, %2 : vector<4x2x16xf32>
    %c0_5 = arith.constant 0 : index
    %c0_6 = arith.constant 0 : index
    %c0_7 = arith.constant 0 : index
    %4 = vector.load %arg2[%c0_5, %c0_6, %c0_7] : memref<4x2x16xf32, #tpu.memory_space<vmem>>, vector<4x2x16xf32>
    tpu.vector_store %arg2[%c0_5, %c0_6, %c0_7], %3 {strides = array<i32>} : memref<4x2x16xf32, #tpu.memory_space<vmem>>, vector<4x2x16xf32>,
    return
  }
}

</mosaic_0001>

<bundles_post_ra>
// kernel: tpu_custom_call.1
= control target key start
LH: loop header
LB: loop body
LE: loop exit
PB: predicated region body
PF: predicated region fallthrough
CT: control target
= control target key end

     0   :  { %7 = vsyncpa [#allocation3], 0  ;;  %s217_s0 = inlined_call_operand.hbm [shape: f32[4,2,16], index: 0, kind: input, shape index: {}]   ;;  %s218_s1 = inlined_call_operand.hbm [shape: f32[4,1,16], index: 1, kind: input, shape index: {}]   ;;  %s219_s2 = inlined_call_operand.hbm [shape: f32[4,2,16], index: 2, kind: output, shape index: {}]  }
   0x1   :  { %8 = vsyncpa [#allocation6], 0 }
   0x2   :  { %9 = vsyncpa [#allocation4], 0  ;;  %s176_s9 = smov [#allocation2]  }
   0x3   :  { %s15_s10 = sshll.u32 %s176_s9, 4  ;;  %s16_s10 = int_to_ptr.vmem [resolvable:$true] %s15_s10 }
   0x4   :  { %s118_s11 = scalar_lea.vmem %s16_s10, 128  ;;  %p123_p1 = scmp.lt.s32.totalorder %s16_s10, %s16_s10 }
   0x5   :  { %p119_p0 = scmp.ne.s32.totalorder %s16_s10, %s118_s11  ;;  %p124_p2 = scmp.lt.s32.totalorder %s118_s11, %s118_s11 }
   0x7   :  { %p125_p3 = por %p124_p2, %p123_p1 }
   0x9   :  { %p126_p4 = pnand %p125_p3, %p119_p0 }
   0xb   :  { %129 = shalt.err (!%p126_p4)
}
   0xc   :  { %s177_s12 = smov 32   ;;  %s178_s13 = smov 2  }
   0xd   :  { %21 = dma.hbm_to_vmem [thread:$0]  %s217_s0, 128, %s16_s10, [#allocation3], %s177_s12, %s177_s12, %s178_s13  }
   0xe   :  { %s179_s16 = smov [#allocation5]  }
   0xf   :  { %s27_s17 = sshll.u32 %s179_s16, 4  ;;  %s28_s17 = int_to_ptr.vmem [resolvable:$true] %s27_s17 }
  0x10   :  { %s138_s18 = scalar_lea.vmem %s28_s17, 64  ;;  %p143_p6 = scmp.lt.s32.totalorder %s28_s17, %s28_s17 }
  0x11   :  { %p139_p5 = scmp.ne.s32.totalorder %s28_s17, %s138_s18  ;;  %p144_p7 = scmp.lt.s32.totalorder %s138_s18, %s138_s18 }
  0x13   :  { %p145_p8 = por %p144_p7, %p143_p6 }
  0x15   :  { %p146_p9 = pnand %p145_p8, %p139_p5 }
  0x17   :  { %149 = shalt.err (!%p146_p9)
}
  0x18   :  { %s180_s19 = smov 16   ;;  %s181_s20 = smov 1  }
  0x19   :  { %33 = dma.hbm_to_vmem [thread:$0]  %s218_s1, 64, %s28_s17, [#allocation6], %s180_s19, %s180_s19, %s181_s20  }
  0x1a   :  { %170 = dma.done.wait [#allocation3], 128  }
  0x1b   :  { %171 = vsyncadd [#allocation3], 4294967168 }
  0x1c   :  { %172 = dma.done.wait [#allocation6], 64  }
  0x1d   :  { %173 = vsyncadd [#allocation6], 4294967232  ;;  %vm76_vm0 = vcmask 123904   ;;  %s182_s0 = smov [#allocation7]   ;;  %v40_v0 = vld [vmem:[#allocation2] sm:$0x3] }
  0x1e   :  { %s86_s23 = sshll.u32 %s182_s0, 4  ;;  %v99_v1 = vld [vmem:[#allocation5] ss:$0 sm:$0xff]  ;;  %v41_v2 = vld [vmem:[#allocation2 + $0x2] sm:$0x3]  ;;  %s87_s23 = int_to_ptr.vmem [resolvable:$true] %s86_s23 }
  0x1f   :  { %v72_v3 = vmul.f32 %v99_v1, %v40_v0  ;;  %v100_v4 = vld [vmem:[#allocation5 + $0x1] ss:$0 sm:$0xff]  ;;  %v42_v5 = vld [vmem:[#allocation2 + $0x4] sm:$0x3]  ;;  %v101_v6 = vld [vmem:[#allocation5 + $0x2] ss:$0 sm:$0xff]  ;;  %p155_p11 = scmp.lt.s32.totalorder %s87_s23, %s87_s23 }
  0x20   :  { %v73_v7 = vmul.f32 %v100_v4, %v41_v2  ;;  %v74_v8 = vmul.f32 %v101_v6, %v42_v5  ;;  %v43_v9 = vld [vmem:[#allocation2 + $0x6] sm:$0x3]  ;;  %v102_v10 = vld [vmem:[#allocation5 + $0x3] ss:$0 sm:$0xff]  ;;  %s150_s1 = scalar_lea.vmem %s87_s23, 128 }
  0x21   :  { %77 = vst.msk [vmem:[#allocation7] sm:$0x3] %vm76_vm0, %v72_v3  ;;  %v75_v11 = vmul.f32 %v102_v10, %v43_v9  ;;  %p151_p10 = scmp.ne.s32.totalorder %s87_s23, %s150_s1  ;;  %p156_p12 = scmp.lt.s32.totalorder %s150_s1, %s150_s1 }
  0x22   :  { %78 = vst.msk [vmem:[#allocation7 + $0x2] sm:$0x3] %vm76_vm0, %v73_v7  ;;  %79 = vst.msk [vmem:[#allocation7 + $0x4] sm:$0x3] %vm76_vm0, %v74_v8 }
  0x23   :  { %80 = vst.msk [vmem:[#allocation7 + $0x6] sm:$0x3] %vm76_vm0, %v75_v11  ;;  %p157_p13 = por %p156_p12, %p155_p11 }
  0x25   :  { %p158_p0 = pnand %p157_p13, %p151_p10 }
  0x27   :  { %161 = shalt.err (!%p158_p0)
}
  0x28   :  { %92 = dma.vmem_to_hbm [thread:$0]  %s87_s23, 128, %s219_s2, [#allocation4], %s177_s12, %s177_s12, %s178_s13  }
  0x29   :  { %174 = dma.done.wait [#allocation4], 128  }
  0x2a   :  { %175 = vsyncadd [#allocation4], 4294967168 }
  0x2b   :  { %96 = vsyncpa [#allocation3], 1 }
  0x2c   :  { %97 = vsyncpa [#allocation6], 1 }
  0x2d   :  { %98 = vsyncpa [#allocation4], 1 }

</bundles_post_ra>
